<compile_context>
chip_gen: v5e
topology: v5e:2x2
jax: 0.10.0
libtpu: 0.0.40
codegen_flags: <defaults>
</compile_context>

<pallas_src>
import functools

import numpy as np
import jax
import jax.numpy as jnp
from jax.experimental import pallas as pl
from jax.experimental.pallas import tpu as pltpu

_SQRT_2_OVER_PI = np.float32(np.sqrt(2.0 / np.pi))
_LANES = 128


def _gelu_tanh_kernel(x_ref, o_ref):
    x = x_ref[...]
    xf = x.astype(jnp.float32)
    inner = _SQRT_2_OVER_PI * (xf + 0.044715 * (xf * xf * xf))
    y = 0.5 * xf * (1.0 + jnp.tanh(inner))
    o_ref[...] = y.astype(o_ref.dtype)


def _round_up(x, m):
    return ((x + m - 1) // m) * m


def _sublane_multiple(dtype):
    itemsize = jnp.dtype(dtype).itemsize
    if itemsize >= 4:
        return 8
    if itemsize == 2:
        return 16
    return 32


@functools.partial(jax.jit, static_argnames=("block_rows",))
def gelu_tanh(x, *, block_rows=8192):
    """Applies 0.5*x*(1+tanh(sqrt(2/pi)*(x+0.044715*x^3))) elementwise."""
    orig_shape = x.shape
    orig_dtype = x.dtype
    n = x.size
    if n == 0:
        return x

    lanes = _LANES
    mult = _sublane_multiple(orig_dtype)
    rows = pl.cdiv(n, lanes)

    # Tile selection:
    #  - sublane-aligned for the dtype (vreg-dense, unmasked loads/stores),
    #  - up to block_rows (8192 x 128 f32 = 4 MiB/block; <= 16 MiB
    #    double-buffered in+out footprint),
    #  - at least 2 grid steps when possible so v7x can shard the parallel
    #    axis across its 2 TensorCores.
    if rows <= mult:
        tile_rows = mult
    else:
        tile_rows = min(block_rows, _round_up((rows + 1) // 2, mult))
    padded_rows = _round_up(rows, tile_rows)
    padded_n = padded_rows * lanes

    flat = x.reshape(-1)
    needs_pad = padded_n != n
    if needs_pad:
        # Ragged path only: one pad copy (gelu(0) == 0, so padding is benign).
        flat = jnp.pad(flat, (0, padded_n - n))
    x2d = flat.reshape(padded_rows, lanes)

    grid = (padded_rows // tile_rows,)
    out2d = pl.pallas_call(
        _gelu_tanh_kernel,
        out_shape=jax.ShapeDtypeStruct((padded_rows, lanes), orig_dtype),
        grid=grid,
        in_specs=[
            pl.BlockSpec((tile_rows, lanes), lambda i: (i, 0),
                         memory_space=pltpu.MemorySpace.VMEM)
        ],
        out_specs=pl.BlockSpec((tile_rows, lanes), lambda i: (i, 0),
                               memory_space=pltpu.MemorySpace.VMEM),
        compiler_params=pltpu.CompilerParams(
            dimension_semantics=("parallel",),
            vmem_limit_bytes=32 << 20,
        ),
    )(x2d)

    if needs_pad:
        return out2d.reshape(-1)[:n].reshape(orig_shape)
    return out2d.reshape(orig_shape)


def _gelu_tanh_ref(x):
    xf = x.astype(jnp.float32)
    return (
        0.5 * xf * (1.0 + jnp.tanh(_SQRT_2_OVER_PI * (xf + 0.044715 * xf ** 3)))
    ).astype(x.dtype)


if __name__ == "__main__":
    key = jax.random.PRNGKey(0)
    k1, k2, k3 = jax.random.split(key, 3)

    # 1) Typical activation tensor (fast path: no padding, free reshape).
    x = jax.random.normal(k1, (2, 4, 16, 16), dtype=jnp.float32)
    out = gelu_tanh(x)
    jax.block_until_ready(out)
    ref = _gelu_tanh_ref(x)
    assert out.shape == x.shape and out.dtype == x.dtype
    np.testing.assert_allclose(np.asarray(out), np.asarray(ref),
                               rtol=1e-6, atol=1e-6)

    # 2) Ragged size (exercises the single-pad path).
    x2 = jax.random.normal(k2, (3, 5, 7), dtype=jnp.float32)
    out2 = gelu_tanh(x2)
    jax.block_until_ready(out2)
    np.testing.assert_allclose(np.asarray(out2),
                               np.asarray(_gelu_tanh_ref(x2)),
                               rtol=1e-6, atol=1e-6)

    # 3) bf16 activations (16-row sublane alignment path).
    x3 = jax.random.normal(k3, (2, 8, 64), dtype=jnp.bfloat16)
    out3 = gelu_tanh(x3)
    jax.block_until_ready(out3)
    assert out3.shape == x3.shape and out3.dtype == x3.dtype
    np.testing.assert_allclose(np.asarray(out3, dtype=np.float32),
                               np.asarray(_gelu_tanh_ref(x3), dtype=np.float32),
                               rtol=2e-2, atol=2e-2)

    print("KERNEL_OK")
</pallas_src>

<mosaic_0001>
module attributes {stable_mosaic.version = 11 : i64} {
  func.func @_gelu_tanh_kernel(%arg0: i32, %arg1: memref<8x128xf32, #tpu.memory_space<vmem>>, %arg2: memref<8x128xf32, #tpu.memory_space<vmem>>) attributes {dimension_semantics = [#tpu.dimension_semantics<parallel>], iteration_bounds = array<i64: 2>, scalar_prefetch = 0 : i64, scratch_operands = 0 : i64, tpu.core_type = #tpu.core_type<tc>, window_params = [{transform_indices = @transform_0, window_bounds = array<i64: 8, 128>}, {transform_indices = @transform_1, window_bounds = array<i64: 8, 128>}]} {
    %c0 = arith.constant 0 : index
    %c0_0 = arith.constant 0 : index
    %0 = vector.load %arg1[%c0, %c0_0] : memref<8x128xf32, #tpu.memory_space<vmem>>, vector<8x128xf32>
    %1 = arith.mulf %0, %0 : vector<8x128xf32>
    %2 = arith.mulf %1, %0 : vector<8x128xf32>
    %cst = arith.constant 4.471500e-02 : f32
    %3 = vector.broadcast %cst : f32 to vector<8x128xf32>
    %4 = arith.mulf %3, %2 : vector<8x128xf32>
    %5 = arith.addf %0, %4 : vector<8x128xf32>
    %cst_1 = arith.constant 0.797884583 : f32
    %6 = vector.broadcast %cst_1 : f32 to vector<8x128xf32>
    %7 = arith.mulf %6, %5 : vector<8x128xf32>
    %cst_2 = arith.constant 5.000000e-01 : f32
    %8 = vector.broadcast %cst_2 : f32 to vector<8x128xf32>
    %9 = arith.mulf %8, %0 : vector<8x128xf32>
    %10 = math.tanh %7 : vector<8x128xf32>
    %cst_3 = arith.constant 1.000000e+00 : f32
    %11 = vector.broadcast %cst_3 : f32 to vector<8x128xf32>
    %12 = arith.addf %11, %10 : vector<8x128xf32>
    %13 = arith.mulf %9, %12 : vector<8x128xf32>
    %c0_4 = arith.constant 0 : index
    %c0_5 = arith.constant 0 : index
    %14 = vector.load %arg2[%c0_4, %c0_5] : memref<8x128xf32, #tpu.memory_space<vmem>>, vector<8x128xf32>
    tpu.vector_store %arg2[%c0_4, %c0_5], %13 {strides = array<i32>} : memref<8x128xf32, #tpu.memory_space<vmem>>, vector<8x128xf32>,
    return
  }
  func.func @transform_0(%arg0: i32) -> (i32, i32) {
    %c0_i32 = arith.constant 0 : i32
    %c0_i32_0 = arith.constant 0 : i32
    return %arg0, %c0_i32 : i32, i32
  }
  func.func @transform_1(%arg0: i32) -> (i32, i32) {
    %c0_i32 = arith.constant 0 : i32
    %c0_i32_0 = arith.constant 0 : i32
    return %arg0, %c0_i32 : i32, i32
  }
}

</mosaic_0001>

<bundles_post_ra>
// kernel: gelu_tanh.1
= control target key start
LH: loop header
LB: loop body
LE: loop exit
PB: predicated region body
PF: predicated region fallthrough
CT: control target
= control target key end

     0   :  { %s213_s6 = smov 0   ;;  %s224_s0 = inlined_call_operand.vmem [shape: f32[16,128], index: 0, kind: input, shape index: {}]   ;;  %s225_s1 = inlined_call_operand.vmem [shape: f32[16,128], index: 1, kind: output, shape index: {}]  }
   0x1 LB: > { %s176_s7 = sadd.s32 4294967295, %s201_s6   ;;  %p180_p0 = scmp.ge.s32.totalorder %s201_s6, 1  ;;  %s201_s6 = sphi %s213_s6, %s11_s6  }
   0x2   : > { %p86_p1 = scmp.lt.s32.totalorder %s201_s6, 3 }
   0x4   : > { %p87_p2 = pnand %p180_p0, %p86_p1 }
   0x5   : > { %p104_p3 = scmp.lt.s32.totalorder (!%p87_p2), %s176_s7, 1 }
   0x6   : > { %90 = sbr.rel (%p87_p2) target bundleno = 37 (0x25), region = 24 }
   0xb   : > { %s227_s7 = smov (!%p104_p3, %s176_s7), 1 }
   0xc   : > { %s181_s8 = sshll.u32 %s227_s7, 3 }
   0xd   : > { %s107_s11 = scalar_lea.vmem %s224_s0, %s181_s8  ;;  %s111_s14 = scalar_lea.vmem %s225_s1, %s181_s8 }
   0xe   : > { %v112_v0 = vld [vmem:[%s107_s11] sm:$0xff] }
   0xf   : > { %v113_v1 = vmul.f32 %v112_v0, %v112_v0  ;;  %v118_v6 = vmul.f32 0.5, %v112_v0 }
  0x11   : > { %v114_v2 = vmul.f32 %v113_v1, %v112_v0 }
  0x13   : > { %v115_v3 = vmul.f32 0.044715, %v114_v2 }
  0x15   : > { %v116_v4 = vadd.f32 %v115_v3, %v112_v0 }
  0x17   : > { %v117_v5 = vmul.f32 0.7978846, %v116_v4 }
  0x19   : > { %193 = vtanh.f32 %v117_v5 }
  0x1f   : > { %v194_v7 = vpop.eup %193 }
  0x20   : > { %v120_v8 = vadd.f32 1.0, %v194_v7 }
  0x22   : > { %v121_v9 = vmul.f32 %v120_v8, %v118_v6 }
  0x24   : > { %122 = vst [vmem:[%s111_s14] sm:$0xff] %v121_v9 }
  0x25 PF: > { %s11_s6 = sadd.s32 1, %s201_s6  }
  0x26   : > { %p8_p4 = scmp.ge.s32.totalorder %s11_s6, 4  }
  0x28   :  { %10 = sbr.rel (!%p8_p4) target bundleno = 1 (0x1), region = 54 }

</bundles_post_ra>
